<compile_context>
chip_gen: v6e
topology: v6e:2x2x1
jax: 0.10.0
libtpu: 0.0.40
codegen_flags: <defaults>
</compile_context>

<pallas_src>
import jax
import jax.numpy as jnp
from jax.experimental import pallas as pl
from jax.experimental.pallas import tpu as pltpu

HIDDEN = 128
IN_FEATURES = 6
K0_PAD = 8                 # layer-0 contraction dim, zero-padded 6 -> 8 for the MXU
N_HIDDEN_LAYERS = 5        # the five 128->128 blocks after the first layer


def _round_up(x, m):
    return (x + m - 1) // m * m


def mlp_kernel(x_ref, w0_ref, ba0_ref, w_ref, ba_ref, o_ref):
    # Layer 0: K=6 contraction, zero-padded to K=8, as one MXU matmul
    # (bf16 operands, f32 accumulation) instead of 6 serial VPU broadcast-FMAs.
    x = x_ref[...].astype(jnp.bfloat16)            # (TILE_B, 8)
    ba0 = ba0_ref[...]                             # (2, 128): row0 = bias, row1 = PReLU alpha
    h = jnp.dot(x, w0_ref[...], preferred_element_type=jnp.float32) + ba0[0:1, :]
    h = jnp.where(h > 0, h, ba0[1:2, :] * h)       # PReLU(128)
    # Dropout -> identity (eval mode)

    # Five 128x128 layers: bf16 operands, f32 accumulation on the MXU.
    for i in range(N_HIDDEN_LAYERS):
        ba = ba_ref[i]                             # (2, 128)
        h = jnp.dot(h.astype(jnp.bfloat16), w_ref[i],
                    preferred_element_type=jnp.float32) + ba[0:1, :]
        h = jnp.where(h > 0, h, ba[1:2, :] * h)    # PReLU(128)
        # Dropout -> identity (eval mode)

    o_ref[...] = h.astype(o_ref.dtype)


def extended_mlp_forward(x, params, tile_b=2048, out_dtype=jnp.float32,
                         min_grid_steps=2):
    """x: (B, 6) float32. Returns (B, 128) in `out_dtype`.

    tile_b: max rows per grid step (multiple of 8 enforced). 2048 is a good default;
    for very large B, 4096-8192 is also fine (VMEM formula below scales with it).
    out_dtype: set jnp.bfloat16 if the consumer tolerates it to halve HBM writeback.
    """
    w0p, ba0, w_stack, ba_stack = params
    B = x.shape[0]

    # Zero-pad the feature dim 6 -> 8 so layer 0 is a single MXU matmul.
    if x.shape[1] != K0_PAD:
        x = jnp.pad(x, ((0, 0), (0, K0_PAD - x.shape[1])))

    # Balanced, padding-aware batch tiling (tile_b always a multiple of 8).
    tile_max = max(8, _round_up(min(tile_b, B), 8))
    n_steps = pl.cdiv(B, tile_max)
    if B > 8:
        # >= 2 grid steps so both v7x TensorCores get work via "parallel" semantics.
        n_steps = max(n_steps, min_grid_steps)
    tile_b = _round_up(pl.cdiv(B, n_steps), 8)
    padded_b = tile_b * n_steps
    if padded_b != B:
        x = jnp.pad(x, ((0, padded_b - B), (0, 0)))

    grid = (n_steps,)

    # VMEM budget: double-buffered resident weights + double-buffered x/out tiles
    # (x lane-pads to 128) + intermediate-activation headroom + slack.
    out_itemsize = jnp.dtype(out_dtype).itemsize
    weight_bytes = 2 * (w0p.nbytes + ba0.nbytes + w_stack.nbytes + ba_stack.nbytes)
    io_bytes = 2 * (tile_b * 128 * 4 + tile_b * HIDDEN * out_itemsize)
    scratch_bytes = 6 * tile_b * HIDDEN * 4
    vmem_limit = int(min(max(weight_bytes + io_bytes + scratch_bytes + (4 << 20),
                             16 << 20), 48 << 20))

    out = pl.pallas_call(
        mlp_kernel,
        out_shape=jax.ShapeDtypeStruct((padded_b, HIDDEN), out_dtype),
        grid=grid,
        in_specs=[
            pl.BlockSpec((tile_b, K0_PAD), lambda i: (i, 0)),                       # x tile
            pl.BlockSpec((K0_PAD, HIDDEN), lambda i: (0, 0)),                       # w0 (pinned)
            pl.BlockSpec((2, HIDDEN), lambda i: (0, 0)),                            # bias/alpha 0
            pl.BlockSpec((N_HIDDEN_LAYERS, HIDDEN, HIDDEN), lambda i: (0, 0, 0)),   # w stack
            pl.BlockSpec((N_HIDDEN_LAYERS, 2, HIDDEN), lambda i: (0, 0, 0)),        # bias/alpha stack
        ],
        out_specs=pl.BlockSpec((tile_b, HIDDEN), lambda i: (i, 0)),
        compiler_params=pltpu.CompilerParams(
            dimension_semantics=("parallel",),
            vmem_limit_bytes=vmem_limit,
        ),
    )(x, w0p, ba0, w_stack, ba_stack)

    return out[:B]


def init_params(key):
    """Deterministic parameter init mimicking PyTorch defaults.

    nn.Linear: weight, bias ~ U(-1/sqrt(fan_in), 1/sqrt(fan_in)).
    nn.PReLU(num_parameters=128): alpha = 0.25.
    Matmul weights stored in bf16 (f32 accumulation in the kernel); layer-0 weight
    is zero-padded along K from 6 to 8 (output unchanged).
    """
    keys = jax.random.split(key, 2 + 2 * N_HIDDEN_LAYERS)

    bound0 = IN_FEATURES ** -0.5
    w0 = jax.random.uniform(keys[0], (IN_FEATURES, HIDDEN), jnp.float32, -bound0, bound0)
    w0p = jnp.zeros((K0_PAD, HIDDEN), jnp.float32).at[:IN_FEATURES].set(w0)
    w0p = w0p.astype(jnp.bfloat16)                                   # (8, 128) bf16
    b0 = jax.random.uniform(keys[1], (HIDDEN,), jnp.float32, -bound0, bound0)
    a0 = jnp.full((HIDDEN,), 0.25, jnp.float32)
    ba0 = jnp.stack([b0, a0], axis=0)                                # (2, 128) f32

    bound = HIDDEN ** -0.5
    w_list, b_list = [], []
    for i in range(N_HIDDEN_LAYERS):
        w_list.append(jax.random.uniform(keys[2 + 2 * i], (HIDDEN, HIDDEN),
                                         jnp.float32, -bound, bound))
        b_list.append(jax.random.uniform(keys[3 + 2 * i], (HIDDEN,),
                                         jnp.float32, -bound, bound))
    w_stack = jnp.stack(w_list, axis=0).astype(jnp.bfloat16)         # (5, 128, 128) bf16
    a_stack = jnp.full((N_HIDDEN_LAYERS, HIDDEN), 0.25, jnp.float32)
    ba_stack = jnp.stack([jnp.stack(b_list, axis=0), a_stack], axis=1)  # (5, 2, 128) f32

    return w0p, ba0, w_stack, ba_stack


def reference_forward(x, params):
    """Pure-JAX reference with the identical bf16-operand / f32-accumulate recipe."""
    w0p, ba0, w_stack, ba_stack = params
    xp = jnp.pad(x, ((0, 0), (0, w0p.shape[0] - x.shape[1])))
    h = jnp.dot(xp.astype(jnp.bfloat16), w0p,
                preferred_element_type=jnp.float32) + ba0[0]
    h = jnp.where(h > 0, h, ba0[1] * h)
    for i in range(N_HIDDEN_LAYERS):
        h = jnp.dot(h.astype(jnp.bfloat16), w_stack[i],
                    preferred_element_type=jnp.float32) + ba_stack[i, 0]
        h = jnp.where(h > 0, h, ba_stack[i, 1] * h)
    return h


if __name__ == "__main__":
    key = jax.random.PRNGKey(0)
    k_x, k_p = jax.random.split(key)
    params = init_params(k_p)

    # (batch, tile_b): single-step small case; padded multi-step case; a case
    # exercising the balanced padding-aware tiling + forced 2-step grid (B=513).
    for batch, tile_b in ((8, 2048), (40, 16), (513, 2048)):
        x = jax.random.normal(jax.random.fold_in(k_x, batch),
                              (batch, IN_FEATURES), dtype=jnp.float32)
        out = jax.block_until_ready(extended_mlp_forward(x, params, tile_b=tile_b))
        ref = reference_forward(x, params)
        assert out.shape == (batch, HIDDEN) and out.dtype == jnp.float32
        assert jnp.allclose(out, ref, atol=2e-3, rtol=2e-3), \
            float(jnp.max(jnp.abs(out - ref)))

    # Optional bfloat16-output path (halves the dominant HBM writeback).
    x = jax.random.normal(jax.random.fold_in(k_x, 7), (64, IN_FEATURES), jnp.float32)
    out_bf16 = jax.block_until_ready(
        extended_mlp_forward(x, params, out_dtype=jnp.bfloat16))
    ref = reference_forward(x, params)
    assert out_bf16.shape == (64, HIDDEN) and out_bf16.dtype == jnp.bfloat16
    assert jnp.allclose(out_bf16.astype(jnp.float32), ref, atol=3e-2, rtol=3e-2)

    print("KERNEL_OK")
</pallas_src>

<mosaic_0001>
module attributes {stable_mosaic.version = 11 : i64} {
  func.func @mlp_kernel(%arg0: i32, %arg1: memref<8x8xf32, #tpu.memory_space<vmem>>, %arg2: memref<8x128xbf16, #tpu.memory_space<vmem>>, %arg3: memref<2x128xf32, #tpu.memory_space<vmem>>, %arg4: memref<5x128x128xbf16, #tpu.memory_space<vmem>>, %arg5: memref<5x2x128xf32, #tpu.memory_space<vmem>>, %arg6: memref<8x128xf32, #tpu.memory_space<vmem>>) attributes {dimension_semantics = [#tpu.dimension_semantics<parallel>], iteration_bounds = array<i64: 1>, scalar_prefetch = 0 : i64, scratch_operands = 0 : i64, tpu.core_type = #tpu.core_type<tc>, window_params = [{transform_indices = @transform_0, window_bounds = array<i64: 8, 8>}, {pipeline_mode = #tpu.pipeline_mode<synchronous>, transform_indices = @transform_1, window_bounds = array<i64: 8, 128>}, {pipeline_mode = #tpu.pipeline_mode<synchronous>, transform_indices = @transform_2, window_bounds = array<i64: 2, 128>}, {pipeline_mode = #tpu.pipeline_mode<synchronous>, transform_indices = @transform_3, window_bounds = array<i64: 5, 128, 128>}, {pipeline_mode = #tpu.pipeline_mode<synchronous>, transform_indices = @transform_4, window_bounds = array<i64: 5, 2, 128>}, {transform_indices = @transform_5, window_bounds = array<i64: 8, 128>}]} {
    %c0 = arith.constant 0 : index
    %c0_0 = arith.constant 0 : index
    %0 = vector.load %arg1[%c0, %c0_0] : memref<8x8xf32, #tpu.memory_space<vmem>>, vector<8x8xf32>
    %1 = arith.truncf %0 : vector<8x8xf32> to vector<8x8xbf16>
    %c0_1 = arith.constant 0 : index
    %c0_2 = arith.constant 0 : index
    %2 = vector.load %arg3[%c0_1, %c0_2] : memref<2x128xf32, #tpu.memory_space<vmem>>, vector<2x128xf32>
    %c0_3 = arith.constant 0 : index
    %c0_4 = arith.constant 0 : index
    %3 = vector.load %arg2[%c0_3, %c0_4] : memref<8x128xbf16, #tpu.memory_space<vmem>>, vector<8x128xbf16>
    %cst = arith.constant dense<0.000000e+00> : vector<8x128xf32>
    %4 = tpu.matmul %1, %3, %cst {dimension_numbers = #tpu.dot_dimension_numbers<[1], [0], [0], [1], [0, 0, 1, 1], [], []>} : vector<8x8xbf16>, vector<8x128xbf16>, vector<8x128xf32> -> vector<8x128xf32>
    %5 = vector.extract_strided_slice %2 {offsets = [0, 0], sizes = [1, 128], strides = [1, 1]} : vector<2x128xf32> to vector<1x128xf32>
    %6 = vector.broadcast %5 : vector<1x128xf32> to vector<8x128xf32>
    %7 = arith.addf %4, %6 : vector<8x128xf32>
    %cst_5 = arith.constant 0.000000e+00 : f32
    %8 = vector.broadcast %cst_5 : f32 to vector<8x128xf32>
    %9 = arith.cmpf ogt, %7, %8 : vector<8x128xf32>
    %10 = vector.extract_strided_slice %2 {offsets = [1, 0], sizes = [1, 128], strides = [1, 1]} : vector<2x128xf32> to vector<1x128xf32>
    %11 = vector.broadcast %10 : vector<1x128xf32> to vector<8x128xf32>
    %12 = arith.mulf %11, %7 : vector<8x128xf32>
    %13 = arith.select %9, %7, %12 : vector<8x128xi1>, vector<8x128xf32>
    %c0_6 = arith.constant 0 : index
    %c0_7 = arith.constant 0 : index
    %c0_8 = arith.constant 0 : index
    %14 = vector.load %arg5[%c0_6, %c0_7, %c0_8] : memref<5x2x128xf32, #tpu.memory_space<vmem>>, vector<1x2x128xf32>
    %15 = vector.shape_cast %14 : vector<1x2x128xf32> to vector<2x128xf32>
    %16 = arith.truncf %13 : vector<8x128xf32> to vector<8x128xbf16>
    %c0_9 = arith.constant 0 : index
    %c0_10 = arith.constant 0 : index
    %c0_11 = arith.constant 0 : index
    %17 = vector.load %arg4[%c0_9, %c0_10, %c0_11] : memref<5x128x128xbf16, #tpu.memory_space<vmem>>, vector<1x128x128xbf16>
    %18 = vector.shape_cast %17 : vector<1x128x128xbf16> to vector<128x128xbf16>
    %cst_12 = arith.constant dense<0.000000e+00> : vector<8x128xf32>
    %19 = tpu.matmul %16, %18, %cst_12 {dimension_numbers = #tpu.dot_dimension_numbers<[1], [0], [0], [1], [0, 0, 1, 1], [], []>} : vector<8x128xbf16>, vector<128x128xbf16>, vector<8x128xf32> -> vector<8x128xf32>
    %20 = vector.extract_strided_slice %15 {offsets = [0, 0], sizes = [1, 128], strides = [1, 1]} : vector<2x128xf32> to vector<1x128xf32>
    %21 = vector.broadcast %20 : vector<1x128xf32> to vector<8x128xf32>
    %22 = arith.addf %19, %21 : vector<8x128xf32>
    %cst_13 = arith.constant 0.000000e+00 : f32
    %23 = vector.broadcast %cst_13 : f32 to vector<8x128xf32>
    %24 = arith.cmpf ogt, %22, %23 : vector<8x128xf32>
    %25 = vector.extract_strided_slice %15 {offsets = [1, 0], sizes = [1, 128], strides = [1, 1]} : vector<2x128xf32> to vector<1x128xf32>
    %26 = vector.broadcast %25 : vector<1x128xf32> to vector<8x128xf32>
    %27 = arith.mulf %26, %22 : vector<8x128xf32>
    %28 = arith.select %24, %22, %27 : vector<8x128xi1>, vector<8x128xf32>
    %c1 = arith.constant 1 : index
    %c0_14 = arith.constant 0 : index
    %c0_15 = arith.constant 0 : index
    %29 = vector.load %arg5[%c1, %c0_14, %c0_15] : memref<5x2x128xf32, #tpu.memory_space<vmem>>, vector<1x2x128xf32>
    %30 = vector.shape_cast %29 : vector<1x2x128xf32> to vector<2x128xf32>
    %31 = arith.truncf %28 : vector<8x128xf32> to vector<8x128xbf16>
    %c1_16 = arith.constant 1 : index
    %c0_17 = arith.constant 0 : index
    %c0_18 = arith.constant 0 : index
    %32 = vector.load %arg4[%c1_16, %c0_17, %c0_18] : memref<5x128x128xbf16, #tpu.memory_space<vmem>>, vector<1x128x128xbf16>
    %33 = vector.shape_cast %32 : vector<1x128x128xbf16> to vector<128x128xbf16>
    %cst_19 = arith.constant dense<0.000000e+00> : vector<8x128xf32>
    %34 = tpu.matmul %31, %33, %cst_19 {dimension_numbers = #tpu.dot_dimension_numbers<[1], [0], [0], [1], [0, 0, 1, 1], [], []>} : vector<8x128xbf16>, vector<128x128xbf16>, vector<8x128xf32> -> vector<8x128xf32>
    %35 = vector.extract_strided_slice %30 {offsets = [0, 0], sizes = [1, 128], strides = [1, 1]} : vector<2x128xf32> to vector<1x128xf32>
    %36 = vector.broadcast %35 : vector<1x128xf32> to vector<8x128xf32>
    %37 = arith.addf %34, %36 : vector<8x128xf32>
    %cst_20 = arith.constant 0.000000e+00 : f32
    %38 = vector.broadcast %cst_20 : f32 to vector<8x128xf32>
    %39 = arith.cmpf ogt, %37, %38 : vector<8x128xf32>
    %40 = vector.extract_strided_slice %30 {offsets = [1, 0], sizes = [1, 128], strides = [1, 1]} : vector<2x128xf32> to vector<1x128xf32>
    %41 = vector.broadcast %40 : vector<1x128xf32> to vector<8x128xf32>
    %42 = arith.mulf %41, %37 : vector<8x128xf32>
    %43 = arith.select %39, %37, %42 : vector<8x128xi1>, vector<8x128xf32>
    %c2 = arith.constant 2 : index
    %c0_21 = arith.constant 0 : index
    %c0_22 = arith.constant 0 : index
    %44 = vector.load %arg5[%c2, %c0_21, %c0_22] : memref<5x2x128xf32, #tpu.memory_space<vmem>>, vector<1x2x128xf32>
    %45 = vector.shape_cast %44 : vector<1x2x128xf32> to vector<2x128xf32>
    %46 = arith.truncf %43 : vector<8x128xf32> to vector<8x128xbf16>
    %c2_23 = arith.constant 2 : index
    %c0_24 = arith.constant 0 : index
    %c0_25 = arith.constant 0 : index
    %47 = vector.load %arg4[%c2_23, %c0_24, %c0_25] : memref<5x128x128xbf16, #tpu.memory_space<vmem>>, vector<1x128x128xbf16>
    %48 = vector.shape_cast %47 : vector<1x128x128xbf16> to vector<128x128xbf16>
    %cst_26 = arith.constant dense<0.000000e+00> : vector<8x128xf32>
    %49 = tpu.matmul %46, %48, %cst_26 {dimension_numbers = #tpu.dot_dimension_numbers<[1], [0], [0], [1], [0, 0, 1, 1], [], []>} : vector<8x128xbf16>, vector<128x128xbf16>, vector<8x128xf32> -> vector<8x128xf32>
    %50 = vector.extract_strided_slice %45 {offsets = [0, 0], sizes = [1, 128], strides = [1, 1]} : vector<2x128xf32> to vector<1x128xf32>
    %51 = vector.broadcast %50 : vector<1x128xf32> to vector<8x128xf32>
    %52 = arith.addf %49, %51 : vector<8x128xf32>
    %cst_27 = arith.constant 0.000000e+00 : f32
    %53 = vector.broadcast %cst_27 : f32 to vector<8x128xf32>
    %54 = arith.cmpf ogt, %52, %53 : vector<8x128xf32>
    %55 = vector.extract_strided_slice %45 {offsets = [1, 0], sizes = [1, 128], strides = [1, 1]} : vector<2x128xf32> to vector<1x128xf32>
    %56 = vector.broadcast %55 : vector<1x128xf32> to vector<8x128xf32>
    %57 = arith.mulf %56, %52 : vector<8x128xf32>
    %58 = arith.select %54, %52, %57 : vector<8x128xi1>, vector<8x128xf32>
    %c3 = arith.constant 3 : index
    %c0_28 = arith.constant 0 : index
    %c0_29 = arith.constant 0 : index
    %59 = vector.load %arg5[%c3, %c0_28, %c0_29] : memref<5x2x128xf32, #tpu.memory_space<vmem>>, vector<1x2x128xf32>
    %60 = vector.shape_cast %59 : vector<1x2x128xf32> to vector<2x128xf32>
    %61 = arith.truncf %58 : vector<8x128xf32> to vector<8x128xbf16>
    %c3_30 = arith.constant 3 : index
    %c0_31 = arith.constant 0 : index
    %c0_32 = arith.constant 0 : index
    %62 = vector.load %arg4[%c3_30, %c0_31, %c0_32] : memref<5x128x128xbf16, #tpu.memory_space<vmem>>, vector<1x128x128xbf16>
    %63 = vector.shape_cast %62 : vector<1x128x128xbf16> to vector<128x128xbf16>
    %cst_33 = arith.constant dense<0.000000e+00> : vector<8x128xf32>
    %64 = tpu.matmul %61, %63, %cst_33 {dimension_numbers = #tpu.dot_dimension_numbers<[1], [0], [0], [1], [0, 0, 1, 1], [], []>} : vector<8x128xbf16>, vector<128x128xbf16>, vector<8x128xf32> -> vector<8x128xf32>
    %65 = vector.extract_strided_slice %60 {offsets = [0, 0], sizes = [1, 128], strides = [1, 1]} : vector<2x128xf32> to vector<1x128xf32>
    %66 = vector.broadcast %65 : vector<1x128xf32> to vector<8x128xf32>
    %67 = arith.addf %64, %66 : vector<8x128xf32>
    %cst_34 = arith.constant 0.000000e+00 : f32
    %68 = vector.broadcast %cst_34 : f32 to vector<8x128xf32>
    %69 = arith.cmpf ogt, %67, %68 : vector<8x128xf32>
    %70 = vector.extract_strided_slice %60 {offsets = [1, 0], sizes = [1, 128], strides = [1, 1]} : vector<2x128xf32> to vector<1x128xf32>
    %71 = vector.broadcast %70 : vector<1x128xf32> to vector<8x128xf32>
    %72 = arith.mulf %71, %67 : vector<8x128xf32>
    %73 = arith.select %69, %67, %72 : vector<8x128xi1>, vector<8x128xf32>
    %c4 = arith.constant 4 : index
    %c0_35 = arith.constant 0 : index
    %c0_36 = arith.constant 0 : index
    %74 = vector.load %arg5[%c4, %c0_35, %c0_36] : memref<5x2x128xf32, #tpu.memory_space<vmem>>, vector<1x2x128xf32>
    %75 = vector.shape_cast %74 : vector<1x2x128xf32> to vector<2x128xf32>
    %76 = arith.truncf %73 : vector<8x128xf32> to vector<8x128xbf16>
    %c4_37 = arith.constant 4 : index
    %c0_38 = arith.constant 0 : index
    %c0_39 = arith.constant 0 : index
    %77 = vector.load %arg4[%c4_37, %c0_38, %c0_39] : memref<5x128x128xbf16, #tpu.memory_space<vmem>>, vector<1x128x128xbf16>
    %78 = vector.shape_cast %77 : vector<1x128x128xbf16> to vector<128x128xbf16>
    %cst_40 = arith.constant dense<0.000000e+00> : vector<8x128xf32>
    %79 = tpu.matmul %76, %78, %cst_40 {dimension_numbers = #tpu.dot_dimension_numbers<[1], [0], [0], [1], [0, 0, 1, 1], [], []>} : vector<8x128xbf16>, vector<128x128xbf16>, vector<8x128xf32> -> vector<8x128xf32>
    %80 = vector.extract_strided_slice %75 {offsets = [0, 0], sizes = [1, 128], strides = [1, 1]} : vector<2x128xf32> to vector<1x128xf32>
    %81 = vector.broadcast %80 : vector<1x128xf32> to vector<8x128xf32>
    %82 = arith.addf %79, %81 : vector<8x128xf32>
    %cst_41 = arith.constant 0.000000e+00 : f32
    %83 = vector.broadcast %cst_41 : f32 to vector<8x128xf32>
    %84 = arith.cmpf ogt, %82, %83 : vector<8x128xf32>
    %85 = vector.extract_strided_slice %75 {offsets = [1, 0], sizes = [1, 128], strides = [1, 1]} : vector<2x128xf32> to vector<1x128xf32>
    %86 = vector.broadcast %85 : vector<1x128xf32> to vector<8x128xf32>
    %87 = arith.mulf %86, %82 : vector<8x128xf32>
    %88 = arith.select %84, %82, %87 : vector<8x128xi1>, vector<8x128xf32>
    %c0_42 = arith.constant 0 : index
    %c0_43 = arith.constant 0 : index
    %89 = vector.load %arg6[%c0_42, %c0_43] : memref<8x128xf32, #tpu.memory_space<vmem>>, vector<8x128xf32>
    tpu.vector_store %arg6[%c0_42, %c0_43], %88 {strides = array<i32>} : memref<8x128xf32, #tpu.memory_space<vmem>>, vector<8x128xf32>,
    return
  }
  func.func @transform_0(%arg0: i32) -> (i32, i32) {
    %c0_i32 = arith.constant 0 : i32
    %c0_i32_0 = arith.constant 0 : i32
    return %arg0, %c0_i32 : i32, i32
  }
  func.func @transform_1(%arg0: i32) -> (i32, i32) {
    %c0_i32 = arith.constant 0 : i32
    %c0_i32_0 = arith.constant 0 : i32
    %c0_i32_1 = arith.constant 0 : i32
    return %c0_i32, %c0_i32_0 : i32, i32
  }
  func.func @transform_2(%arg0: i32) -> (i32, i32) {
    %c0_i32 = arith.constant 0 : i32
    %c0_i32_0 = arith.constant 0 : i32
    %c0_i32_1 = arith.constant 0 : i32
    return %c0_i32, %c0_i32_0 : i32, i32
  }
  func.func @transform_3(%arg0: i32) -> (i32, i32, i32) {
    %c0_i32 = arith.constant 0 : i32
    %c0_i32_0 = arith.constant 0 : i32
    %c0_i32_1 = arith.constant 0 : i32
    %c0_i32_2 = arith.constant 0 : i32
    return %c0_i32, %c0_i32_0, %c0_i32_1 : i32, i32, i32
  }
  func.func @transform_4(%arg0: i32) -> (i32, i32, i32) {
    %c0_i32 = arith.constant 0 : i32
    %c0_i32_0 = arith.constant 0 : i32
    %c0_i32_1 = arith.constant 0 : i32
    %c0_i32_2 = arith.constant 0 : i32
    return %c0_i32, %c0_i32_0, %c0_i32_1 : i32, i32, i32
  }
  func.func @transform_5(%arg0: i32) -> (i32, i32) {
    %c0_i32 = arith.constant 0 : i32
    %c0_i32_0 = arith.constant 0 : i32
    return %arg0, %c0_i32 : i32, i32
  }
}

</mosaic_0001>

<bundles_post_ra>
// kernel: tpu_custom_call.1
= control target key start
LH: loop header
LB: loop body
LE: loop exit
PB: predicated region body
PF: predicated region fallthrough
CT: control target
= control target key end

     0   :  { %10 = vsyncpa [#allocation3], 0  ;;  %s1228_s0 = inlined_call_operand.hbm [shape: f32[8,8], index: 0, kind: input, shape index: {}]   ;;  %s1229_s1 = inlined_call_operand.hbm [shape: bf16[8,128], index: 1, kind: input, shape index: {}]   ;;  %s1230_s2 = inlined_call_operand.vmem [shape: f32[2,128], index: 2, kind: input, shape index: {}]   ;;  %s1231_s3 = inlined_call_operand.hbm [shape: bf16[5,128,128], index: 3, kind: input, shape index: {}]   ;;  %s1232_s4 = inlined_call_operand.hbm [shape: f32[5,2,128], index: 4, kind: input, shape index: {}]   ;;  %s1233_s5 = inlined_call_operand.hbm [shape: f32[8,128], index: 5, kind: output, shape index: {}]  }
   0x1   :  { %11 = vsyncpa [#allocation6], 0 }
   0x2   :  { %12 = vsyncpa [#allocation9], 0 }
   0x3   :  { %13 = vsyncpa [#allocation4], 0  ;;  %s1100_s18 = smov [#allocation5]   ;;  %s1101_s20 = smov [#allocation2]  }
   0x4   :  { %s30_s19 = sshll.u32 %s1100_s18, 4  ;;  %s20_s21 = sshll.u32 %s1101_s20, 4  ;;  %s31_s19 = int_to_ptr.vmem [resolvable:$true] %s30_s19  ;;  %s21_s21 = int_to_ptr.vmem [resolvable:$true] %s20_s21 }
   0x5   :  { %s1000_s22 = scalar_lea.vmem %s31_s19, 64  ;;  %p1005_p1 = scmp.lt.s32.totalorder %s31_s19, %s31_s19 }
   0x6   :  { %p1001_p0 = scmp.ne.s32.totalorder %s31_s19, %s1000_s22  ;;  %p1006_p2 = scmp.lt.s32.totalorder %s1000_s22, %s1000_s22 }
   0x8   :  { %p1007_p3 = por %p1006_p2, %p1005_p1 }
   0xa   :  { %p1008_p4 = pnand %p1007_p3, %p1001_p0 }
   0xc   :  { %1011 = shalt.err (!%p1008_p4)
}
   0xd   :  { %33 = dma.hbm_to_vmem [thread:$0]  %s1229_s1, 64, %s31_s19, [#allocation6]  }
   0xe   :  { %s1020_s25 = scalar_lea.vmem %s21_s21, 128  ;;  %p1025_p6 = scmp.lt.s32.totalorder %s21_s21, %s21_s21 }
   0xf   :  { %p1021_p5 = scmp.ne.s32.totalorder %s21_s21, %s1020_s25  ;;  %p1026_p7 = scmp.lt.s32.totalorder %s1020_s25, %s1020_s25 }
  0x11   :  { %p1027_p8 = por %p1026_p7, %p1025_p6 }
  0x13   :  { %p1028_p9 = pnand %p1027_p8, %p1021_p5 }
  0x15   :  { %1031 = shalt.err (!%p1028_p9)
}
  0x16   :  { %23 = dma.hbm_to_vmem [thread:$0]  %s1228_s0, 128, %s21_s21, [#allocation3]  }
  0x17   :  { %s1102_s28 = smov [#allocation7]  }
  0x18   :  { %s41_s29 = sshll.u32 %s1102_s28, 4  ;;  %s42_s29 = int_to_ptr.vmem [resolvable:$true] %s41_s29 }
  0x19   :  { %s1040_s30 = scalar_lea.vmem %s42_s29, 5120  ;;  %p1045_p11 = scmp.lt.s32.totalorder %s42_s29, %s42_s29 }
  0x1a   :  { %p1041_p10 = scmp.ne.s32.totalorder %s42_s29, %s1040_s30  ;;  %p1046_p12 = scmp.lt.s32.totalorder %s1040_s30, %s1040_s30 }
  0x1c   :  { %p1047_p13 = por %p1046_p12, %p1045_p11 }
  0x1e   :  { %p1048_p0 = pnand %p1047_p13, %p1041_p10 }
  0x20   :  { %1051 = shalt.err (!%p1048_p0)
}
  0x21   :  { %s1103_s1 = smov 64   ;;  %s1104_s6 = smov 4  }
  0x22   :  { %47 = dma.hbm_to_vmem [thread:$0]  %s1231_s3, 5120, %s42_s29, [#allocation6], %s1103_s1, %s1103_s1, %s1104_s6  }
  0x23   :  { %s1105_s9 = smov [#allocation8]  }
  0x24   :  { %s53_s10 = sshll.u32 %s1105_s9, 4  ;;  %s54_s10 = int_to_ptr.vmem [resolvable:$true] %s53_s10 }
  0x25   :  { %s1060_s0 = scalar_lea.vmem %s54_s10, 160  ;;  %p1065_p2 = scmp.lt.s32.totalorder %s54_s10, %s54_s10 }
  0x26   :  { %p1061_p1 = scmp.ne.s32.totalorder %s54_s10, %s1060_s0  ;;  %p1066_p3 = scmp.lt.s32.totalorder %s1060_s0, %s1060_s0 }
  0x28   :  { %p1067_p4 = por %p1066_p3, %p1065_p2 }
  0x2a   :  { %p1068_p5 = pnand %p1067_p4, %p1061_p1 }
  0x2c   :  { %1071 = shalt.err (!%p1068_p5)
}
  0x2d   :  { %s1106_s11 = smov 32   ;;  %s1107_s12 = smov 2  }
  0x2e   :  { %59 = dma.hbm_to_vmem [thread:$0]  %s1232_s4, 160, %s54_s10, [#allocation9], %s1106_s11, %s1106_s11, %s1107_s12  }
  0x2f   :  { %1092 = dma.done.wait [#allocation3], 128  }
  0x30   :  { %1093 = vsyncadd [#allocation3], 4294967168 }
  0x31   :  { %1094 = dma.done.wait [#allocation6], 5184  }
  0x32   :  { %1095 = vsyncadd [#allocation6], 4294962112 }
  0x33   :  { %1096 = dma.done.wait [#allocation9], 160  }
  0x34   :  { %1097 = vsyncadd [#allocation9], 4294967136  ;;  %v1108_v0 = vmov 0.0   ;;  %vm1109_vm0 = vmmov 0   ;;  %vm85_vm1 = vcmask 1043456   ;;  %v73_v2 = vld [vmem:[#allocation2] sm:$0xff]  ;;  %v77_v19 = vlaneseq }
  0x35   :  { %835 = vmatprep.subr.bf16.mxu0 %v1108_v0  ;;  %837 = vmatprep.mubr.msk.bf16.mxu0 %vm1109_vm0, %v1108_v0  ;;  %v76_v1 = vld [vmem:[#allocation5] sm:$0xf]  ;;  %v74_v4 = vpack.c.bf16 %v73_v2, %v73_v2  ;;  %vm81_vm2 = vcmask 64512   ;;  %v953_v6 = vld [vmem:[#allocation7 + $0x30] sm:$0xff]   ;;  %v954_v7 = vld [vmem:[#allocation7 + $0x28] sm:$0xff]  }
  0x36   :  { %841 = vmatprep.subr.bf16.mxu1 %v1108_v0  ;;  %857 = vmatprep.mubr.msk.bf16.mxu1 %vm1109_vm0, %v1108_v0  ;;  %v87_v3 = vsel %vm85_vm1, %v76_v1, 0  ;;  %v952_v5 = vld [vmem:[#allocation7 + $0x38] sm:$0xff]   ;;  %v955_v8 = vld [vmem:[#allocation7 + $0x20] sm:$0xff]   ;;  %v957_v10 = vld [vmem:[#allocation7 + $0x10] sm:$0xff]   ;;  %v78_v20 = vshrl.u32 %v77_v19, 7 }
  0x37   :  { %836 = vmatpush3.bf16.msra.mxu0 %v87_v3  ;;  %842 = vmatpush3.bf16.msra.mxu1 %v952_v5  ;;  %v956_v9 = vld [vmem:[#allocation7 + $0x18] sm:$0xff]   ;;  %v958_v11 = vld [vmem:[#allocation7 + $0x8] sm:$0xff]   ;;  %v959_v12 = vld [vmem:[#allocation7] sm:$0xff]  }
  0x38   :  { %861 = vmatprep.subr.bf16.mxu0 %v1108_v0  ;;  %843 = vmatprep.subr.bf16.mxu1 %v1108_v0  ;;  %v960_v13 = vld [vmem:[#allocation7 + $0x78] sm:$0xff]   ;;  %v961_v14 = vld [vmem:[#allocation7 + $0x70] sm:$0xff]   ;;  %v962_v15 = vld [vmem:[#allocation7 + $0x68] sm:$0xff]   ;;  %v1176_v21 = vsub.s32 0, %v78_v20  ;;  %v1181_v23 = vsub.s32 1, %v78_v20 }
  0x39   :  { %v963_v16 = vld [vmem:[#allocation7 + $0x60] sm:$0xff]   ;;  %v964_v17 = vld [vmem:[#allocation7 + $0x58] sm:$0xff]   ;;  %v965_v18 = vld [vmem:[#allocation7 + $0x50] sm:$0xff]  }
  0x3a   :  { %838 = vmatmul.mubr.msk.bf16.vlgmr.msra.gmra.mxu0 %vm81_vm2, %v74_v4  ;;  %v75_v22 = vld [vmem:[%s1230_s2] sm:$0x3]  ;;  %v966_v34 = vld [vmem:[#allocation7 + $0x48] sm:$0xff]   ;;  %v967_v35 = vld [vmem:[#allocation7 + $0x40] sm:$0xff]   ;;  %s1110_s2 = smov [#allocation10]  }
  0x3b   :  { %877 = vmatprep.mubr.msk.bf16.mxu0 %vm1109_vm0, %v1108_v0  ;;  %844 = vmatpush3.bf16.msra.mxu1 %v953_v6  ;;  %v80_v24 = vrot.slane %v75_v22, %v1176_v21  ;;  %v133_v25 = vrot.slane %v75_v22, %v1181_v23  ;;  %v968_v36 = vld [vmem:[#allocation7 + $0xb8] sm:$0xff]   ;;  %v969_v37 = vld [vmem:[#allocation7 + $0xb0] sm:$0xff]   ;;  %v970_v38 = vld [vmem:[#allocation7 + $0xa8] sm:$0xff]   ;;  %s736_s15 = sshll.u32 %s1110_s2, 4  ;;  %s737_s15 = int_to_ptr.vmem [resolvable:$true] %s736_s15 }
  0x3c   :  { %845 = vmatprep.subr.bf16.mxu1 %v1108_v0  ;;  %862 = vmatpush3.bf16.msra.mxu0 %v960_v13  ;;  %v971_v39 = vld [vmem:[#allocation7 + $0xa0] sm:$0xff]   ;;  %v972_v40 = vld [vmem:[#allocation7 + $0x98] sm:$0xff]   ;;  %v973_v41 = vld [vmem:[#allocation7 + $0x90] sm:$0xff]   ;;  %s1072_s16 = scalar_lea.vmem %s737_s15, 128  ;;  %p1077_p7 = scmp.lt.s32.totalorder %s737_s15, %s737_s15 }
  0x3d   :  { %863 = vmatprep.subr.bf16.mxu0 %v1108_v0  ;;  %v136_v42 = vld [vmem:[#allocation8] sm:$0x3]  ;;  %v974_v53 = vld [vmem:[#allocation7 + $0x88] sm:$0xff]   ;;  %v976_v55 = vld [vmem:[#allocation7 + $0xf8] sm:$0xff]   ;;  %p1073_p6 = scmp.ne.s32.totalorder %s737_s15, %s1072_s16  ;;  %p1078_p8 = scmp.lt.s32.totalorder %s1072_s16, %s1072_s16 }
  0x3e   :  { %v157_v43 = vrot.slane %v136_v42, %v1176_v21  ;;  %v250_v44 = vrot.slane %v136_v42, %v1181_v23  ;;  %v975_v54 = vld [vmem:[#allocation7 + $0x80] sm:$0xff]   ;;  %v977_v56 = vld [vmem:[#allocation7 + $0xf0] sm:$0xff]   ;;  %v978_v57 = vld [vmem:[#allocation7 + $0xe8] sm:$0xff]  }
  0x3f   :  { %846 = vmatpush3.bf16.msra.mxu1 %v954_v7  ;;  %v979_v58 = vld [vmem:[#allocation7 + $0xe0] sm:$0xff]   ;;  %v980_v59 = vld [vmem:[#allocation7 + $0xd8] sm:$0xff]   ;;  %v981_v60 = vld [vmem:[#allocation7 + $0xd0] sm:$0xff]   ;;  %p1079_p9 = por %p1078_p8, %p1077_p7 }
  0x40   :  { %847 = vmatprep.subr.bf16.mxu1 %v1108_v0  ;;  %864 = vmatpush3.bf16.msra.mxu0 %v961_v14  ;;  %v254_v61 = vld [vmem:[#allocation8 + $0x2] sm:$0x3]  ;;  %v986_v13 = vld [vmem:[#allocation7 + $0x128] sm:$0xff]  }
  0x41   :  { %865 = vmatprep.subr.bf16.mxu0 %v1108_v0  ;;  %v276_v62 = vrot.slane %v254_v61, %v1176_v21  ;;  %v369_v63 = vrot.slane %v254_v61, %v1181_v23  ;;  %v987_v14 = vld [vmem:[#allocation7 + $0x120] sm:$0xff]   ;;  %p1080_p10 = pnand %p1079_p9, %p1073_p6 }
  0x43   :  { %848 = vmatpush3.bf16.msra.mxu1 %v955_v8 }
  0x44   :  { %849 = vmatprep.subr.bf16.mxu1 %v1108_v0  ;;  %866 = vmatpush3.bf16.msra.mxu0 %v962_v15  ;;  %v988_v15 = vld [vmem:[#allocation7 + $0x118] sm:$0xff]  }
  0x45   :  { %867 = vmatprep.subr.bf16.mxu0 %v1108_v0 }
  0x47   :  { %850 = vmatpush3.bf16.msra.mxu1 %v956_v9  ;;  %v982_v9 = vld [vmem:[#allocation7 + $0xc8] sm:$0xff]  }
  0x48   :  { %851 = vmatprep.subr.bf16.mxu1 %v1108_v0  ;;  %868 = vmatpush3.bf16.msra.mxu0 %v963_v16  ;;  %v989_v16 = vld [vmem:[#allocation7 + $0x110] sm:$0xff]  }
  0x49   :  { %869 = vmatprep.subr.bf16.mxu0 %v1108_v0 }
  0x4b   :  { %852 = vmatpush3.bf16.msra.mxu1 %v957_v10  ;;  %v983_v10 = vld [vmem:[#allocation7 + $0xc0] sm:$0xff]  }
  0x4c   :  { %853 = vmatprep.subr.bf16.mxu1 %v1108_v0  ;;  %870 = vmatpush3.bf16.msra.mxu0 %v964_v17  ;;  %v373_v17 = vld [vmem:[#allocation8 + $0x4] sm:$0x3] }
  0x4d   :  { %871 = vmatprep.subr.bf16.mxu0 %v1108_v0  ;;  %v488_v19 = vrot.slane %v373_v17, %v1181_v23 }
  0x4f   :  { %854 = vmatpush3.bf16.msra.mxu1 %v958_v11  ;;  %v984_v11 = vld [vmem:[#allocation7 + $0x138] sm:$0xff]  }
  0x50   :  { %855 = vmatprep.subr.bf16.mxu1 %v1108_v0  ;;  %872 = vmatpush3.bf16.msra.mxu0 %v965_v18  ;;  %v395_v18 = vrot.slane %v373_v17, %v1176_v21 }
  0x51   :  { %873 = vmatprep.subr.bf16.mxu0 %v1108_v0 }
  0x53   :  { %856 = vmatpush3.bf16.msra.mxu1 %v959_v12  ;;  %v985_v12 = vld [vmem:[#allocation7 + $0x130] sm:$0xff]  }
  0x54   :  { %881 = vmatprep.subr.bf16.mxu1 %v1108_v0  ;;  %874 = vmatpush3.bf16.msra.mxu0 %v966_v34 }
  0x55   :  { %875 = vmatprep.subr.bf16.mxu0 %v1108_v0 }
  0x58   :  { %876 = vmatpush3.bf16.msra.mxu0 %v967_v35 }
  0x59   :  { %901 = vmatprep.subr.bf16.mxu0 %v1108_v0 }
  0xfa   :  { %v123_v26 = vpop.f32.mrf.mxu0 }
  0xfb   :  { %v124_v27 = vadd.f32 %v123_v26, %v80_v24 }
  0xfc   :  { %v839_v28 = vpop.f32.mrf.mxu0 }
  0xfd   :  { %vm129_vm3 = vcmp.gt.f32.partialorder %v124_v27, 0.0  ;;  %v134_v29 = vmul.f32 %v133_v25, %v124_v27 }
  0xfe   :  { %v126_v30 = vpop.f32.mrf.mxu0 }
  0xff   :  { %v135_v31 = vsel %vm129_vm3, %v124_v27, %v134_v29  ;;  %v990_v30 = vld [vmem:[#allocation7 + $0x108] sm:$0xff]  }
 0x100   :  { %v840_v32 = vpop.f32.mrf.mxu0  ;;  %v137_v33 = vpack.c.bf16 %v135_v31, %v135_v31  ;;  %v991_v31 = vld [vmem:[#allocation7 + $0x100] sm:$0xff]  }
 0x101   :  { %v492_v32 = vld [vmem:[#allocation8 + $0x6] sm:$0x3] }
 0x102   :  { %858 = vmatmul.mubr.bf16.vlgmr.msra.gmra.mxu1 %v137_v33  ;;  %v514_v33 = vrot.slane %v492_v32, %v1176_v21  ;;  %v607_v34 = vrot.slane %v492_v32, %v1181_v23 }
 0x103   :  { %897 = vmatprep.mubr.msk.bf16.mxu1 %vm1109_vm0, %v1108_v0  ;;  %882 = vmatpush3.bf16.msra.mxu1 %v968_v36 }
 0x104   :  { %883 = vmatprep.subr.bf16.mxu1 %v1108_v0 }
 0x107   :  { %884 = vmatpush3.bf16.msra.mxu1 %v969_v37 }
 0x108   :  { %885 = vmatprep.subr.bf16.mxu1 %v1108_v0 }
 0x10b   :  { %886 = vmatpush3.bf16.msra.mxu1 %v970_v38 }
 0x10c   :  { %887 = vmatprep.subr.bf16.mxu1 %v1108_v0 }
 0x10f   :  { %888 = vmatpush3.bf16.msra.mxu1 %v971_v39 }
 0x110   :  { %889 = vmatprep.subr.bf16.mxu1 %v1108_v0 }
 0x113   :  { %890 = vmatpush3.bf16.msra.mxu1 %v972_v40 }
 0x114   :  { %891 = vmatprep.subr.bf16.mxu1 %v1108_v0 }
 0x117   :  { %892 = vmatpush3.bf16.msra.mxu1 %v973_v41 }
 0x118   :  { %893 = vmatprep.subr.bf16.mxu1 %v1108_v0 }
 0x11b   :  { %894 = vmatpush3.bf16.msra.mxu1 %v974_v53 }
 0x11c   :  { %895 = vmatprep.subr.bf16.mxu1 %v1108_v0 }
 0x11f   :  { %896 = vmatpush3.bf16.msra.mxu1 %v975_v54 }
 0x120   :  { %921 = vmatprep.subr.bf16.mxu1 %v1108_v0 }
 0x1c2   :  { %v240_v45 = vpop.f32.mrf.mxu1 }
 0x1c3   :  { %v241_v46 = vadd.f32 %v240_v45, %v157_v43  ;;  %v611_v43 = vld [vmem:[#allocation8 + $0x8] sm:$0x3] }
 0x1c4   :  { %v859_v47 = vpop.f32.mrf.mxu1 }
 0x1c5   :  { %vm246_vm4 = vcmp.gt.f32.partialorder %v241_v46, 0.0  ;;  %v251_v48 = vmul.f32 %v250_v44, %v241_v46  ;;  %v726_v44 = vrot.slane %v611_v43, %v1181_v23 }
 0x1c6   :  { %v243_v49 = vpop.f32.mrf.mxu1 }
 0x1c7   :  { %v252_v50 = vsel %vm246_vm4, %v241_v46, %v251_v48 }
 0x1c8   :  { %v255_v51 = vpack.c.bf16 %v252_v50, %v252_v50  ;;  %v860_v52 = vpop.f32.mrf.mxu1 }
 0x1ca   :  { %878 = vmatmul.mubr.bf16.vlgmr.msra.gmra.mxu0 %v255_v51 }
 0x1cb   :  { %917 = vmatprep.mubr.msk.bf16.mxu0 %vm1109_vm0, %v1108_v0  ;;  %902 = vmatpush3.bf16.msra.mxu0 %v976_v55 }
 0x1cc   :  { %903 = vmatprep.subr.bf16.mxu0 %v1108_v0 }
 0x1cf   :  { %904 = vmatpush3.bf16.msra.mxu0 %v977_v56 }
 0x1d0   :  { %905 = vmatprep.subr.bf16.mxu0 %v1108_v0 }
 0x1d3   :  { %906 = vmatpush3.bf16.msra.mxu0 %v978_v57 }
 0x1d4   :  { %907 = vmatprep.subr.bf16.mxu0 %v1108_v0 }
 0x1d7   :  { %908 = vmatpush3.bf16.msra.mxu0 %v979_v58 }
 0x1d8   :  { %909 = vmatprep.subr.bf16.mxu0 %v1108_v0 }
 0x1db   :  { %910 = vmatpush3.bf16.msra.mxu0 %v980_v59 }
 0x1dc   :  { %911 = vmatprep.subr.bf16.mxu0 %v1108_v0 }
 0x1df   :  { %912 = vmatpush3.bf16.msra.mxu0 %v981_v60 }
 0x1e0   :  { %913 = vmatprep.subr.bf16.mxu0 %v1108_v0 }
 0x1e3   :  { %914 = vmatpush3.bf16.msra.mxu0 %v982_v9 }
 0x1e4   :  { %915 = vmatprep.subr.bf16.mxu0 %v1108_v0 }
 0x1e7   :  { %916 = vmatpush3.bf16.msra.mxu0 %v983_v10 }
 0x28a   :  { %v359_v1 = vpop.f32.mrf.mxu0 }
 0x28b   :  { %v360_v2 = vadd.f32 %v359_v1, %v276_v62 }
 0x28c   :  { %v879_v3 = vpop.f32.mrf.mxu0 }
 0x28d   :  { %vm365_vm5 = vcmp.gt.f32.partialorder %v360_v2, 0.0  ;;  %v370_v4 = vmul.f32 %v369_v63, %v360_v2 }
 0x28e   :  { %v362_v5 = vpop.f32.mrf.mxu0 }
 0x28f   :  { %v371_v6 = vsel %vm365_vm5, %v360_v2, %v370_v4 }
 0x290   :  { %v374_v7 = vpack.c.bf16 %v371_v6, %v371_v6  ;;  %v880_v8 = vpop.f32.mrf.mxu0 }
 0x292   :  { %898 = vmatmul.mubr.bf16.vlgmr.msra.gmra.mxu1 %v374_v7 }
 0x293   :  { %937 = vmatprep.mubr.msk.bf16.mxu1 %vm1109_vm0, %v1108_v0  ;;  %922 = vmatpush3.bf16.msra.mxu1 %v984_v11 }
 0x294   :  { %923 = vmatprep.subr.bf16.mxu1 %v1108_v0 }
 0x297   :  { %924 = vmatpush3.bf16.msra.mxu1 %v985_v12 }
 0x298   :  { %925 = vmatprep.subr.bf16.mxu1 %v1108_v0 }
 0x29b   :  { %926 = vmatpush3.bf16.msra.mxu1 %v986_v13 }
 0x29c   :  { %927 = vmatprep.subr.bf16.mxu1 %v1108_v0 }
 0x29f   :  { %928 = vmatpush3.bf16.msra.mxu1 %v987_v14 }
 0x2a0   :  { %929 = vmatprep.subr.bf16.mxu1 %v1108_v0 }
 0x2a3   :  { %930 = vmatpush3.bf16.msra.mxu1 %v988_v15 }
 0x2a4   :  { %931 = vmatprep.subr.bf16.mxu1 %v1108_v0 }
 0x2a7   :  { %932 = vmatpush3.bf16.msra.mxu1 %v989_v16 }
 0x2a8   :  { %933 = vmatprep.subr.bf16.mxu1 %v1108_v0 }
 0x2ab   :  { %934 = vmatpush3.bf16.msra.mxu1 %v990_v30 }
 0x2ac   :  { %935 = vmatprep.subr.bf16.mxu1 %v1108_v0  ;;  %v633_v0 = vrot.slane %v611_v43, %v1176_v21 }
 0x2af   :  { %936 = vmatpush3.bf16.msra.mxu1 %v991_v31 }
 0x352   :  { %v478_v20 = vpop.f32.mrf.mxu1 }
 0x353   :  { %v479_v22 = vadd.f32 %v478_v20, %v395_v18 }
 0x354   :  { %v899_v24 = vpop.f32.mrf.mxu1 }
 0x355   :  { %vm484_vm6 = vcmp.gt.f32.partialorder %v479_v22, 0.0  ;;  %v489_v25 = vmul.f32 %v488_v19, %v479_v22 }
 0x356   :  { %v481_v26 = vpop.f32.mrf.mxu1 }
 0x357   :  { %v490_v27 = vsel %vm484_vm6, %v479_v22, %v489_v25 }
 0x358   :  { %v493_v28 = vpack.c.bf16 %v490_v27, %v490_v27  ;;  %v900_v29 = vpop.f32.mrf.mxu1 }
 0x35a   :  { %918 = vmatmul.mubr.bf16.vlgmr.msra.gmra.mxu0 %v493_v28 }
 0x41a   :  { %v597_v35 = vpop.f32.mrf.mxu0 }
 0x41b   :  { %v598_v36 = vadd.f32 %v597_v35, %v514_v33 }
 0x41c   :  { %v919_v37 = vpop.f32.mrf.mxu0 }
 0x41d   :  { %vm603_vm7 = vcmp.gt.f32.partialorder %v598_v36, 0.0  ;;  %v608_v38 = vmul.f32 %v607_v34, %v598_v36 }
 0x41e   :  { %v600_v39 = vpop.f32.mrf.mxu0 }
 0x41f   :  { %v609_v40 = vsel %vm603_vm7, %v598_v36, %v608_v38 }
 0x420   :  { %v612_v41 = vpack.c.bf16 %v609_v40, %v609_v40  ;;  %v920_v42 = vpop.f32.mrf.mxu0 }
 0x422   :  { %938 = vmatmul.mubr.bf16.vlgmr.msra.gmra.mxu1 %v612_v41 }
 0x4e2   :  { %v716_v45 = vpop.f32.mrf.mxu1 }
 0x4e3   :  { %v717_v46 = vadd.f32 %v716_v45, %v633_v0 }
 0x4e4   :  { %v939_v47 = vpop.f32.mrf.mxu1 }
 0x4e5   :  { %v727_v48 = vmul.f32 %v726_v44, %v717_v46  ;;  %vm722_vm8 = vcmp.gt.f32.partialorder %v717_v46, 0.0 }
 0x4e6   :  { %v719_v49 = vpop.f32.mrf.mxu1 }
 0x4e7   :  { %v728_v50 = vsel %vm722_vm8, %v717_v46, %v727_v48 }
 0x4e8   :  { %v940_v51 = vpop.f32.mrf.mxu1  ;;  %729 = vst [vmem:[#allocation10] sm:$0xff] %v728_v50 }
 0x4e9   :  { %1083 = shalt.err (!%p1080_p10)
}
 0x4ea   :  { %739 = dma.vmem_to_hbm [thread:$0]  %s737_s15, 128, %s1233_s5, [#allocation4]  }
 0x4eb   :  { %1098 = dma.done.wait [#allocation4], 128  }
 0x4ec   :  { %1099 = vsyncadd [#allocation4], 4294967168 }
 0x4ed   :  { %743 = vsyncpa [#allocation3], 1 }
 0x4ee   :  { %744 = vsyncpa [#allocation6], 1 }
 0x4ef   :  { %745 = vsyncpa [#allocation9], 1 }
 0x4f0   :  { %746 = vsyncpa [#allocation4], 1 }

</bundles_post_ra>
